<compile_context>
chip_gen: v6e
topology: v6e:2x2x1
jax: 0.10.0
libtpu: 0.0.40
codegen_flags: <defaults>
</compile_context>

<pallas_src>
import math

import jax
import jax.numpy as jnp
from jax.experimental import pallas as pl
from jax.experimental.pallas import tpu as pltpu


# ---------------------------------------------------------------------------
# Kernels
# ---------------------------------------------------------------------------
def _make_single_k_kernel(precision):
    """K fits in a single tile: write the dot result directly to the output."""

    def kernel(x_ref, w_ref, o_ref):
        o_ref[...] = jnp.dot(
            x_ref[...],
            w_ref[...],
            preferred_element_type=jnp.float32,
            precision=precision,
        ).astype(o_ref.dtype)

    return kernel


def _make_multi_k_kernel(precision):
    """K-tiled reduction with an f32 VMEM accumulator (K is the last grid axis)."""

    def kernel(x_ref, w_ref, o_ref, acc_ref):
        @pl.when(pl.program_id(2) == 0)
        def _init():
            acc_ref[...] = jnp.zeros_like(acc_ref)

        acc_ref[...] += jnp.dot(
            x_ref[...],
            w_ref[...],
            preferred_element_type=jnp.float32,
            precision=precision,
        )

        @pl.when(pl.program_id(2) == pl.num_programs(2) - 1)
        def _store():
            o_ref[...] = acc_ref[...].astype(o_ref.dtype)

    return kernel


# ---------------------------------------------------------------------------
# Tile selection helpers
# ---------------------------------------------------------------------------
def _round_up(x: int, m: int) -> int:
    return ((x + m - 1) // m) * m


def _cdiv(a: int, b: int) -> int:
    return (a + b - 1) // b


_M_LADDER = (512, 256, 128, 64, 32, 16, 8)
_N_LADDER = (512, 256, 128)
_K_LADDER = (2048, 1024, 512, 256, 128)


def _pick_tile(base: int, align: int, cap: int, ladder) -> int:
    """Largest tile <= cap with <= ~12.5% padding of `base` (base % align == 0)."""
    cap = max(align, cap)
    if base <= cap:
        cands = (base,) + tuple(c for c in ladder if c < base)
    else:
        cands = tuple(c for c in ladder if c <= cap)
    for c in cands:  # descending
        if _round_up(base, c) * 8 <= base * 9:  # padded/base <= 1.125
            return c
    return align


# ---------------------------------------------------------------------------
# Wrapper
# ---------------------------------------------------------------------------
def onnx_matmul(
    x: jax.Array,
    weight: jax.Array,
    *,
    use_bf16_mxu: bool = False,
    precision=None,
    max_tm: int = 512,
    max_tn: int = 512,
    max_tk: int = 2048,
) -> jax.Array:
    """y = x @ weight  (weight has shape (out_features, in_features))."""
    if x.ndim < 1:
        raise ValueError("input must have at least 1 dim")
    if weight.ndim != 2:
        raise ValueError(f"weight must be 2-D, got ndim={weight.ndim}")

    squeeze_front = x.ndim == 1
    if squeeze_front:
        x = x[None, :]

    k = x.shape[-1]
    if k != weight.shape[0]:
        raise ValueError(
            f"last dim of input ({k}) must equal weight.shape[0] ({weight.shape[0]})"
        )
    n = weight.shape[1]

    lead_shape = x.shape[:-1]
    m = int(math.prod(lead_shape)) if lead_shape else 1

    # Deterministic dtypes (matches torch.matmul promotion for float inputs).
    out_dtype = jnp.promote_types(x.dtype, weight.dtype)
    if use_bf16_mxu and jnp.issubdtype(out_dtype, jnp.floating):
        compute_dtype = jnp.bfloat16
    elif jnp.issubdtype(out_dtype, jnp.floating):
        compute_dtype = out_dtype
    else:
        # TODO(synk): integer matmul is accumulated in f32 on the MXU (v7x has no
        # integer datapath); not bit-exact with torch integer matmul.
        compute_dtype = jnp.float32

    # Explicit MXU precision: deliberate 1-pass (bf16) vs multi-pass (f32) choice.
    if precision is None:
        precision = (
            jax.lax.Precision.DEFAULT
            if compute_dtype == jnp.bfloat16
            else jax.lax.Precision.HIGHEST
        )

    # Degenerate shapes.
    if m == 0 or n == 0 or k == 0:
        out = jnp.zeros((*lead_shape, n), out_dtype)
        return out[0] if squeeze_front else out

    x2d = x.reshape(m, k)
    w2d = weight
    if x2d.dtype != compute_dtype:
        x2d = x2d.astype(compute_dtype)
    if w2d.dtype != compute_dtype:
        w2d = w2d.astype(compute_dtype)

    # ---- Tile selection --------------------------------------------------
    m_base = _round_up(m, 8)
    n_base = _round_up(n, 128)
    k_base = _round_up(k, 128)

    tm = _pick_tile(m_base, 8, max_tm, _M_LADDER)
    tn = _pick_tile(n_base, 128, max_tn, _N_LADDER)
    tk = _pick_tile(k_base, 128, max_tk, _K_LADDER)

    # v7x megacore: make sure there are >= 2 parallel (i, j) output tiles when
    # the split keeps tiles MXU-native; irrelevant (but harmless) on v5e/v6e.
    if _cdiv(m_base, tm) * _cdiv(n_base, tn) < 2:
        if tn >= 512:
            tn = _round_up(tn // 2, 128)
        elif tm >= 256:
            tm = _round_up(tm // 2, 8)

    # VMEM budget guard (<= ~40 MiB working set; safety net for odd dtypes,
    # and keeps the kernel portable to v7x's 64 MiB per-TC VMEM).
    bytes_in = jnp.dtype(compute_dtype).itemsize
    bytes_out = jnp.dtype(out_dtype).itemsize

    def _footprint(tk_: int) -> int:
        return (
            2 * (tm * tk_ + tk_ * tn) * bytes_in  # double-buffered inputs
            + 2 * tm * tn * bytes_out             # double-buffered output
            + tm * tn * 4                         # f32 accumulator
        )

    while tk > 128 and _footprint(tk) > 40 * 1024 * 1024:
        tk = max(128, _round_up(tk // 2, 128))

    vmem_limit = int(min(56 * 1024 * 1024, max(16 * 1024 * 1024, 2 * _footprint(tk))))

    # ---- Pad only when needed (skip the extra HBM pass for aligned shapes) --
    mp = _round_up(m, tm)
    kp = _round_up(k, tk)
    np_ = _round_up(n, tn)
    if (mp, kp) != (m, k):
        x2d = jnp.pad(x2d, ((0, mp - m), (0, kp - k)))
    if (kp, np_) != (k, n):
        w2d = jnp.pad(w2d, ((0, kp - k), (0, np_ - n)))

    grid_m, grid_n, grid_k = mp // tm, np_ // tn, kp // tk

    if grid_k == 1:
        # Single-K fast path: 2-D grid, no accumulator round-trip.
        out_padded = pl.pallas_call(
            _make_single_k_kernel(precision),
            out_shape=jax.ShapeDtypeStruct((mp, np_), out_dtype),
            grid=(grid_m, grid_n),
            in_specs=[
                pl.BlockSpec((tm, kp), lambda i, j: (i, 0)),
                pl.BlockSpec((kp, tn), lambda i, j: (0, j)),
            ],
            out_specs=pl.BlockSpec((tm, tn), lambda i, j: (i, j)),
            compiler_params=pltpu.CompilerParams(
                dimension_semantics=("parallel", "parallel"),
                vmem_limit_bytes=vmem_limit,
            ),
        )(x2d, w2d)
    else:
        out_padded = pl.pallas_call(
            _make_multi_k_kernel(precision),
            out_shape=jax.ShapeDtypeStruct((mp, np_), out_dtype),
            grid=(grid_m, grid_n, grid_k),
            in_specs=[
                pl.BlockSpec((tm, tk), lambda i, j, kk: (i, kk)),
                pl.BlockSpec((tk, tn), lambda i, j, kk: (kk, j)),
            ],
            out_specs=pl.BlockSpec((tm, tn), lambda i, j, kk: (i, j)),
            scratch_shapes=[pltpu.VMEM((tm, tn), jnp.float32)],
            compiler_params=pltpu.CompilerParams(
                dimension_semantics=("parallel", "parallel", "arbitrary"),
                vmem_limit_bytes=vmem_limit,
            ),
        )(x2d, w2d)

    out2d = out_padded[:m, :n]
    out = out2d.reshape(*lead_shape, n)
    if squeeze_front:
        out = out[0]
    return out


# ---------------------------------------------------------------------------
# Deterministic parameter init matching nn.init.kaiming_uniform_(a=sqrt(5)):
#   fan_in = in_features (2nd dim of weight), bound = 1 / sqrt(fan_in)
# ---------------------------------------------------------------------------
def init_weight(key, in_features: int, out_features: int, dtype=jnp.float32):
    bound = 1.0 / math.sqrt(in_features)
    return jax.random.uniform(
        key, (out_features, in_features), dtype=dtype, minval=-bound, maxval=bound
    )


if __name__ == "__main__":
    key = jax.random.PRNGKey(0)
    k_w, k_x, k_w2, k_x2 = jax.random.split(key, 4)

    # --- Test 1: module-sized shapes (single-K fast path) -------------------
    in_features, out_features = 32, 64
    batch, seq = 2, 8
    weight = init_weight(k_w, in_features, out_features)                  # (64, 32)
    x = jax.random.normal(k_x, (batch, seq, out_features), jnp.float32)   # (2, 8, 64)

    y = onnx_matmul(x, weight)                                            # (2, 8, 32)
    jax.block_until_ready(y)
    y_ref = jnp.matmul(x, weight)
    assert y.shape == (batch, seq, in_features)
    assert jnp.allclose(y, y_ref, atol=1e-5, rtol=1e-5)

    # --- Test 2: force multi-K-step grid (exercises accumulator path) -------
    in2, out2 = 128, 256
    w2 = init_weight(k_w2, in2, out2)                                      # (256, 128)
    x2 = jax.random.normal(k_x2, (4, 16, out2), jnp.float32)               # (4, 16, 256)
    y2 = onnx_matmul(x2, w2, max_tk=128)                                   # 2 K-steps
    jax.block_until_ready(y2)
    y2_ref = jnp.matmul(x2, w2)
    assert y2.shape == (4, 16, in2)
    assert jnp.allclose(y2, y2_ref, atol=1e-4, rtol=1e-4)

    print("KERNEL_OK")
</pallas_src>

<mosaic_0001>
module attributes {stable_mosaic.version = 11 : i64} {
  func.func @kernel(%arg0: i32, %arg1: i32, %arg2: memref<16x128xf32, #tpu.memory_space<vmem>>, %arg3: memref<128x128xf32, #tpu.memory_space<vmem>>, %arg4: memref<16x128xf32, #tpu.memory_space<vmem>>) attributes {dimension_semantics = [#tpu.dimension_semantics<parallel>, #tpu.dimension_semantics<parallel>], iteration_bounds = array<i64: 1, 1>, scalar_prefetch = 0 : i64, scratch_operands = 0 : i64, tpu.core_type = #tpu.core_type<tc>, window_params = [{transform_indices = @transform_0, window_bounds = array<i64: 16, 128>}, {transform_indices = @transform_1, window_bounds = array<i64: 128, 128>}, {transform_indices = @transform_2, window_bounds = array<i64: 16, 128>}]} {
    %c0 = arith.constant 0 : index
    %c0_0 = arith.constant 0 : index
    %0 = vector.load %arg2[%c0, %c0_0] : memref<16x128xf32, #tpu.memory_space<vmem>>, vector<16x128xf32>
    %c0_1 = arith.constant 0 : index
    %c0_2 = arith.constant 0 : index
    %1 = vector.load %arg3[%c0_1, %c0_2] : memref<128x128xf32, #tpu.memory_space<vmem>>, vector<128x128xf32>
    %cst = arith.constant dense<0.000000e+00> : vector<16x128xf32>
    %2 = tpu.matmul %0, %1, %cst {dimension_numbers = #tpu.dot_dimension_numbers<[1], [0], [0], [1], [0, 0, 1, 1], [], []>, precision = #tpu.contract_precision<fp32>} : vector<16x128xf32>, vector<128x128xf32>, vector<16x128xf32> -> vector<16x128xf32>
    %c0_3 = arith.constant 0 : index
    %c0_4 = arith.constant 0 : index
    %3 = vector.load %arg4[%c0_3, %c0_4] : memref<16x128xf32, #tpu.memory_space<vmem>>, vector<16x128xf32>
    tpu.vector_store %arg4[%c0_3, %c0_4], %2 {strides = array<i32>} : memref<16x128xf32, #tpu.memory_space<vmem>>, vector<16x128xf32>,
    return
  }
  func.func @transform_0(%arg0: i32, %arg1: i32) -> (i32, i32) {
    %c0_i32 = arith.constant 0 : i32
    %c0_i32_0 = arith.constant 0 : i32
    return %arg0, %c0_i32 : i32, i32
  }
  func.func @transform_1(%arg0: i32, %arg1: i32) -> (i32, i32) {
    %c0_i32 = arith.constant 0 : i32
    %c0_i32_0 = arith.constant 0 : i32
    return %c0_i32, %arg1 : i32, i32
  }
  func.func @transform_2(%arg0: i32, %arg1: i32) -> (i32, i32) {
    %c0_i32 = arith.constant 0 : i32
    return %arg0, %arg1 : i32, i32
  }
}

</mosaic_0001>

<bundles_post_ra>
// kernel: tpu_custom_call.1
= control target key start
LH: loop header
LB: loop body
LE: loop exit
PB: predicated region body
PF: predicated region fallthrough
CT: control target
= control target key end

     0   :  { %7 = vsyncpa [#allocation3], 0  ;;  %s1539_s0 = inlined_call_operand.hbm [shape: f32[16,128], index: 0, kind: input, shape index: {}]   ;;  %s1540_s1 = inlined_call_operand.hbm [shape: f32[128,128], index: 1, kind: input, shape index: {}]   ;;  %s1541_s2 = inlined_call_operand.hbm [shape: f32[16,128], index: 2, kind: output, shape index: {}]  }
   0x1   :  { %8 = vsyncpa [#allocation6], 0 }
   0x2   :  { %9 = vsyncpa [#allocation4], 0  ;;  %s1151_s9 = smov [#allocation2]  }
   0x3   :  { %s15_s10 = sshll.u32 %s1151_s9, 4  ;;  %s16_s10 = int_to_ptr.vmem [resolvable:$true] %s15_s10 }
   0x4   :  { %s1093_s11 = scalar_lea.vmem %s16_s10, 256  ;;  %p1098_p1 = scmp.lt.s32.totalorder %s16_s10, %s16_s10 }
   0x5   :  { %p1094_p0 = scmp.ne.s32.totalorder %s16_s10, %s1093_s11  ;;  %p1099_p2 = scmp.lt.s32.totalorder %s1093_s11, %s1093_s11 }
   0x7   :  { %p1100_p3 = por %p1099_p2, %p1098_p1 }
   0x9   :  { %p1101_p4 = pnand %p1100_p3, %p1094_p0 }
   0xb   :  { %1104 = shalt.err (!%p1101_p4)
}
   0xc   :  { %s1152_s12 = smov 128   ;;  %s1153_s13 = smov 8  }
   0xd   :  { %21 = dma.hbm_to_vmem [thread:$0]  %s1539_s0, 256, %s16_s10, [#allocation3], %s1152_s12, %s1152_s12, %s1153_s13  }
   0xe   :  { %s1154_s16 = smov [#allocation5]  }
   0xf   :  { %s27_s17 = sshll.u32 %s1154_s16, 4  ;;  %s28_s17 = int_to_ptr.vmem [resolvable:$true] %s27_s17 }
  0x10   :  { %s1113_s18 = scalar_lea.vmem %s28_s17, 2048  ;;  %p1118_p6 = scmp.lt.s32.totalorder %s28_s17, %s28_s17 }
  0x11   :  { %p1114_p5 = scmp.ne.s32.totalorder %s28_s17, %s1113_s18  ;;  %p1119_p7 = scmp.lt.s32.totalorder %s1113_s18, %s1113_s18 }
  0x13   :  { %p1120_p8 = por %p1119_p7, %p1118_p6 }
  0x15   :  { %p1121_p9 = pnand %p1120_p8, %p1114_p5 }
  0x17   :  { %1124 = shalt.err (!%p1121_p9)
}
  0x18   :  { %33 = dma.hbm_to_vmem [thread:$0]  %s1540_s1, 2048, %s28_s17, [#allocation6], %s1152_s12, %s1152_s12, %s1153_s13  }
  0x19   :  { %1145 = dma.done.wait [#allocation3], 256  }
  0x1a   :  { %1146 = vsyncadd [#allocation3], 4294967040 }
  0x1b   :  { %1147 = dma.done.wait [#allocation6], 2048  }
  0x1c   :  { %1148 = vsyncadd [#allocation6], 4294965248  ;;  %v57_v0 = vld [vmem:[#allocation5 + $0x78] sm:$0xff]  ;;  %v56_v1 = vld [vmem:[#allocation5 + $0x70] sm:$0xff]  ;;  %s1155_s0 = smov [#allocation7]  }
  0x1d   :  { %v55_v2 = vld [vmem:[#allocation5 + $0x68] sm:$0xff]  ;;  %v1183_v3 = vand.u32 4294901760, %v57_v0  ;;  %v1185_v4 = vand.u32 4294901760, %v56_v1  ;;  %v54_v6 = vld [vmem:[#allocation5 + $0x60] sm:$0xff]  ;;  %v53_v7 = vld [vmem:[#allocation5 + $0x58] sm:$0xff]  ;;  %s749_s1 = sshll.u32 %s1155_s0, 4  ;;  %s750_s1 = int_to_ptr.vmem [resolvable:$true] %s749_s1 }
  0x1e   :  { %v1187_v5 = vand.u32 4294901760, %v55_v2  ;;  %v52_v8 = vld [vmem:[#allocation5 + $0x50] sm:$0xff]  ;;  %v1189_v9 = vand.u32 4294901760, %v54_v6  ;;  %v1191_v10 = vand.u32 4294901760, %v53_v7  ;;  %v51_v12 = vld [vmem:[#allocation5 + $0x48] sm:$0xff]  ;;  %v50_v13 = vld [vmem:[#allocation5 + $0x40] sm:$0xff]  ;;  %p1130_p11 = scmp.lt.s32.totalorder %s750_s1, %s750_s1 }
  0x1f   :  { %v1193_v11 = vand.u32 4294901760, %v52_v8  ;;  %870 = vmatprep.subr.mxu0 %v1183_v3  ;;  %v1197_v14 = vsub.f32 %v57_v0, %v1183_v3  ;;  %v1200_v15 = vsub.f32 %v56_v1, %v1185_v4  ;;  %v1202_v16 = vand.u32 4294901760, %v51_v12  ;;  %v49_v18 = vld [vmem:[#allocation5 + $0x38] sm:$0xff]  ;;  %v48_v25 = vld [vmem:[#allocation5 + $0x30] sm:$0xff]  ;;  %v47_v35 = vld [vmem:[#allocation5 + $0x28] sm:$0xff]  ;;  %s1125_s21 = scalar_lea.vmem %s750_s1, 256 }
  0x20   :  { %v1205_v17 = vsub.f32 %v55_v2, %v1187_v5  ;;  %871 = vmatpush3.msra.mxu0 %v1183_v3  ;;  %v1209_v19 = vsub.f32 %v54_v6, %v1189_v9  ;;  %v1212_v20 = vsub.f32 %v53_v7, %v1191_v10  ;;  %v1224_v24 = vand.u32 4294901760, %v50_v13  ;;  %v46_v40 = vld [vmem:[#allocation5 + $0x20] sm:$0xff]  ;;  %v45_v48 = vld [vmem:[#allocation5 + $0x18] sm:$0xff]  ;;  %v40_v49 = vld [vmem:[#allocation2] sm:$0xff]  ;;  %p1126_p10 = scmp.ne.s32.totalorder %s750_s1, %s1125_s21  ;;  %p1131_p12 = scmp.lt.s32.totalorder %s1125_s21, %s1125_s21 }
  0x21   :  { %872 = vmatprep.subr.mxu0 %v1185_v4  ;;  %v1216_v21 = vand.u32 4294901760, %v1197_v14  ;;  %v1219_v22 = vand.u32 4294901760, %v1200_v15  ;;  %v1230_v27 = vand.u32 4294901760, %v49_v18  ;;  %v1236_v29 = vsub.f32 %v52_v8, %v1193_v11  ;;  %v41_v54 = vld [vmem:[#allocation2 + $0x8] sm:$0xff]  ;;  %v44_v59 = vld [vmem:[#allocation5 + $0x10] sm:$0xff]  ;;  %v43_v2 = vld [vmem:[#allocation5 + $0x8] sm:$0xff] }
  0x22   :  { %v1222_v23 = vand.u32 4294901760, %v1205_v17  ;;  %873 = vmatpush3.msra.mxu0 %v1185_v4  ;;  %v1228_v26 = vand.u32 4294901760, %v1209_v19  ;;  %v1233_v28 = vand.u32 4294901760, %v1212_v20  ;;  %v1246_v33 = vsub.f32 %v51_v12, %v1202_v16  ;;  %p1132_p13 = por %p1131_p12, %p1130_p11 }
  0x23   :  { %874 = vmatprep.subr.mxu0 %v1187_v5  ;;  %v163_v30 = vsub.f32 %v1197_v14, %v1216_v21  ;;  %v170_v31 = vsub.f32 %v1200_v15, %v1219_v22  ;;  %v1249_v34 = vand.u32 4294901760, %v48_v25  ;;  %v1255_v39 = vand.u32 4294901760, %v1236_v29 }
  0x24   :  { %v177_v32 = vsub.f32 %v1205_v17, %v1222_v23  ;;  %875 = vmatpush3.msra.mxu0 %v1187_v5  ;;  %v184_v38 = vsub.f32 %v1209_v19, %v1228_v26  ;;  %v191_v41 = vsub.f32 %v1212_v20, %v1233_v28  ;;  %v1261_v42 = vand.u32 4294901760, %v1246_v33  ;;  %p1133_p0 = pnand %p1132_p13, %p1126_p10 }
  0x25   :  { %876 = vmatprep.subr.mxu0 %v1189_v9  ;;  %v164_v36 = vand.u32 4294901760, %v163_v30  ;;  %v171_v37 = vand.u32 4294901760, %v170_v31  ;;  %v1264_v43 = vsub.f32 %v50_v13, %v1224_v24  ;;  %v1267_v45 = vand.u32 4294901760, %v47_v35 }
  0x26   :  { %877 = vmatpush3.msra.mxu0 %v1189_v9  ;;  %v178_v44 = vand.u32 4294901760, %v177_v32  ;;  %v1270_v46 = vsub.f32 %v49_v18, %v1230_v27  ;;  %v1273_v47 = vand.u32 4294901760, %v46_v40  ;;  %v185_v50 = vand.u32 4294901760, %v184_v38  ;;  %v42_v18 = vld [vmem:[#allocation5] sm:$0xff] }
  0x27   :  { %878 = vmatprep.subr.mxu0 %v1191_v10  ;;  %905 = vmatprep.subr.mxu1 %v164_v36  ;;  %v198_v51 = vsub.f32 %v1236_v29, %v1255_v39  ;;  %v1279_v52 = vand.u32 4294901760, %v1264_v43  ;;  %v1282_v53 = vsub.f32 %v48_v25, %v1249_v34  ;;  %v192_v55 = vand.u32 4294901760, %v191_v41 }
  0x28   :  { %879 = vmatpush3.msra.mxu0 %v1191_v10  ;;  %906 = vmatpush3.msra.mxu1 %v164_v36  ;;  %v205_v56 = vsub.f32 %v1246_v33, %v1261_v42  ;;  %v1288_v57 = vand.u32 4294901760, %v45_v48  ;;  %v1291_v58 = vand.u32 4294901760, %v1270_v46  ;;  %v1294_v60 = vsub.f32 %v47_v35, %v1267_v45 }
  0x29   :  { %880 = vmatprep.subr.mxu0 %v1193_v11  ;;  %907 = vmatprep.subr.mxu1 %v171_v37  ;;  %v1296_v61 = vand.u32 4294901760, %v40_v49  ;;  %v1299_v62 = vand.u32 4294901760, %v41_v54  ;;  %v199_v63 = vand.u32 4294901760, %v198_v51  ;;  %v212_v0 = vsub.f32 %v1264_v43, %v1279_v52 }
  0x2a   :  { %881 = vmatpush3.msra.mxu0 %v1193_v11  ;;  %908 = vmatpush3.msra.mxu1 %v171_v37  ;;  %v1305_v1 = vand.u32 4294901760, %v1282_v53  ;;  %v1308_v6 = vsub.f32 %v46_v40, %v1273_v47  ;;  %v206_v7 = vand.u32 4294901760, %v205_v56  ;;  %v1311_v8 = vand.u32 4294901760, %v44_v59 }
  0x2b   :  { %882 = vmatprep.subr.mxu0 %v1202_v16  ;;  %909 = vmatprep.subr.mxu1 %v178_v44  ;;  %v219_v12 = vsub.f32 %v1270_v46, %v1291_v58  ;;  %v1317_v13 = vand.u32 4294901760, %v1294_v60  ;;  %v1320_v25 = vsub.f32 %v40_v49, %v1296_v61  ;;  %v1323_v30 = vsub.f32 %v45_v48, %v1288_v57 }
  0x2c   :  { %883 = vmatpush3.msra.mxu0 %v1202_v16  ;;  %910 = vmatpush3.msra.mxu1 %v178_v44  ;;  %v1326_v31 = vand.u32 4294901760, %v43_v2  ;;  %v1329_v32 = vsub.f32 %v41_v54, %v1299_v62  ;;  %v213_v35 = vand.u32 4294901760, %v212_v0  ;;  %v226_v36 = vsub.f32 %v1282_v53, %v1305_v1 }
  0x2d   :  { %884 = vmatprep.subr.mxu0 %v1224_v24  ;;  %911 = vmatprep.subr.mxu1 %v185_v50  ;;  %v1335_v37 = vand.u32 4294901760, %v1308_v6  ;;  %v1338_v38 = vand.u32 4294901760, %v42_v18  ;;  %v1341_v40 = vsub.f32 %v44_v59, %v1311_v8  ;;  %v220_v41 = vand.u32 4294901760, %v219_v12 }
  0x2e   :  { %885 = vmatpush3.msra.mxu0 %v1224_v24  ;;  %912 = vmatpush3.msra.mxu1 %v185_v50  ;;  %v233_v44 = vsub.f32 %v1294_v60, %v1317_v13  ;;  %v1543_v48 = vand.u32 4294901760, %v1320_v25  ;;  %v1348_v49 = vand.u32 4294901760, %v1323_v30  ;;  %v1542_v50 = vand.u32 4294901760, %v1329_v32 }
  0x2f   :  { %886 = vmatprep.subr.mxu0 %v1230_v27  ;;  %913 = vmatprep.subr.mxu1 %v192_v55  ;;  %v1353_v51 = vsub.f32 %v43_v2, %v1326_v31  ;;  %v227_v54 = vand.u32 4294901760, %v226_v36  ;;  %v1360_v56 = vand.u32 4294901760, %v1341_v40  ;;  %v1363_v59 = vsub.f32 %v42_v18, %v1338_v38 }
  0x30   :  { %887 = vmatpush3.msra.mxu0 %v1230_v27  ;;  %914 = vmatpush3.msra.mxu1 %v192_v55  ;;  %v240_v55 = vsub.f32 %v1308_v6, %v1335_v37  ;;  %v142_v0 = vsub.f32 %v1320_v25, %v1543_v48  ;;  %v247_v2 = vsub.f32 %v1323_v30, %v1348_v49 }
  0x31   :  { %888 = vmatprep.subr.mxu0 %v1249_v34  ;;  %915 = vmatprep.subr.mxu1 %v199_v63  ;;  %v1376_v12 = vand.u32 4294901760, %v1353_v51  ;;  %v1383_v36 = vand.u32 4294901760, %v1363_v59 }
  0x32   :  { %889 = vmatpush3.msra.mxu0 %v1249_v34  ;;  %916 = vmatpush3.msra.mxu1 %v199_v63  ;;  %v234_v63 = vand.u32 4294901760, %v233_v44  ;;  %v241_v18 = vand.u32 4294901760, %v240_v55  ;;  %v248_v44 = vand.u32 4294901760, %v247_v2 }
  0x33   :  { %890 = vmatprep.subr.mxu0 %v1267_v45  ;;  %917 = vmatprep.subr.mxu1 %v206_v7  ;;  %v261_v55 = vsub.f32 %v1353_v51, %v1376_v12  ;;  %v268_v48 = vsub.f32 %v1363_v59, %v1383_v36 }
  0x34   :  { %891 = vmatpush3.msra.mxu0 %v1267_v45  ;;  %918 = vmatpush3.msra.mxu1 %v206_v7  ;;  %v152_v7 = vsub.f32 %v1329_v32, %v1542_v50 }
  0x35   :  { %892 = vmatprep.subr.mxu0 %v1273_v47  ;;  %919 = vmatprep.subr.mxu1 %v213_v35 }
  0x36   :  { %893 = vmatpush3.msra.mxu0 %v1273_v47  ;;  %920 = vmatpush3.msra.mxu1 %v213_v35  ;;  %v254_v35 = vsub.f32 %v1341_v40, %v1360_v56  ;;  %v153_v50 = vand.u32 4294901760, %v152_v7 }
  0x37   :  { %894 = vmatprep.subr.mxu0 %v1288_v57  ;;  %921 = vmatprep.subr.mxu1 %v220_v41 }
  0x38   :  { %895 = vmatpush3.msra.mxu0 %v1288_v57  ;;  %922 = vmatpush3.msra.mxu1 %v220_v41  ;;  %v143_v41 = vand.u32 4294901760, %v142_v0  ;;  %v269_v0 = vand.u32 4294901760, %v268_v48 }
  0x39   :  { %896 = vmatprep.subr.mxu0 %v1311_v8  ;;  %923 = vmatprep.subr.mxu1 %v227_v54 }
  0x3a   :  { %897 = vmatpush3.msra.mxu0 %v1311_v8  ;;  %924 = vmatpush3.msra.mxu1 %v227_v54  ;;  %v255_v54 = vand.u32 4294901760, %v254_v35 }
  0x3b   :  { %898 = vmatprep.subr.mxu0 %v1326_v31  ;;  %925 = vmatprep.subr.mxu1 %v234_v63 }
  0x3c   :  { %899 = vmatpush3.msra.mxu0 %v1326_v31  ;;  %926 = vmatpush3.msra.mxu1 %v234_v63  ;;  %v262_v63 = vand.u32 4294901760, %v261_v55 }
  0x3d   :  { %900 = vmatprep.subr.mxu0 %v1338_v38  ;;  %927 = vmatprep.subr.mxu1 %v241_v18 }
  0x3e   :  { %901 = vmatpush3.msra.mxu0 %v1338_v38  ;;  %928 = vmatpush3.msra.mxu1 %v241_v18 }
  0x3f   :  { %902 = vmatprep.mubr.f32.mxu0 %v143_v41  ;;  %929 = vmatprep.subr.mxu1 %v248_v44 }
  0x40   :  { %940 = vmatprep.subr.mxu0 %v1197_v14  ;;  %903 = vmatmul.mubr.f32.vlgmr.msra.gmra.mxu0 %v153_v50 }
  0x41   :  { %930 = vmatpush3.msra.mxu1 %v248_v44  ;;  %941 = vmatpush3.msra.mxu0 %v1197_v14  ;;  %v1544_v14 = vand.u32 4294901760, %v1320_v25 }
  0x42   :  { %931 = vmatprep.subr.mxu1 %v255_v54  ;;  %942 = vmatprep.subr.mxu0 %v1200_v15 }
  0x43   :  { %932 = vmatpush3.msra.mxu1 %v255_v54  ;;  %943 = vmatpush3.msra.mxu0 %v1200_v15  ;;  %v1545_v15 = vand.u32 4294901760, %v1329_v32 }
  0x44   :  { %933 = vmatprep.subr.mxu1 %v262_v63  ;;  %944 = vmatprep.subr.mxu0 %v1205_v17 }
  0x45   :  { %934 = vmatpush3.msra.mxu1 %v262_v63  ;;  %945 = vmatpush3.msra.mxu0 %v1205_v17 }
  0x46   :  { %935 = vmatprep.subr.mxu1 %v269_v0  ;;  %946 = vmatprep.subr.mxu0 %v1209_v19 }
  0x47   :  { %936 = vmatpush3.msra.mxu1 %v269_v0  ;;  %937 = vmatprep.mubr.f32.mxu1 %v1296_v61 }
  0x48   :  { %947 = vmatpush3.msra.mxu0 %v1209_v19  ;;  %938 = vmatmul.mubr.f32.vlgmr.msra.gmra.mxu1 %v1299_v62 }
  0x49   :  { %948 = vmatprep.subr.mxu0 %v1212_v20  ;;  %975 = vmatprep.subr.mxu1 %v1183_v3 }
  0x4a   :  { %949 = vmatpush3.msra.mxu0 %v1212_v20  ;;  %976 = vmatpush3.msra.mxu1 %v1183_v3 }
  0x4b   :  { %950 = vmatprep.subr.mxu0 %v1236_v29  ;;  %977 = vmatprep.subr.mxu1 %v1185_v4 }
  0x4c   :  { %951 = vmatpush3.msra.mxu0 %v1236_v29  ;;  %978 = vmatpush3.msra.mxu1 %v1185_v4 }
  0x4d   :  { %952 = vmatprep.subr.mxu0 %v1246_v33  ;;  %979 = vmatprep.subr.mxu1 %v1187_v5 }
  0x4e   :  { %953 = vmatpush3.msra.mxu0 %v1246_v33  ;;  %980 = vmatpush3.msra.mxu1 %v1187_v5 }
  0x4f   :  { %954 = vmatprep.subr.mxu0 %v1264_v43  ;;  %981 = vmatprep.subr.mxu1 %v1189_v9 }
  0x50   :  { %955 = vmatpush3.msra.mxu0 %v1264_v43  ;;  %982 = vmatpush3.msra.mxu1 %v1189_v9 }
  0x51   :  { %956 = vmatprep.subr.mxu0 %v1270_v46  ;;  %983 = vmatprep.subr.mxu1 %v1191_v10 }
  0x52   :  { %957 = vmatpush3.msra.mxu0 %v1270_v46  ;;  %984 = vmatpush3.msra.mxu1 %v1191_v10 }
  0x53   :  { %958 = vmatprep.subr.mxu0 %v1282_v53  ;;  %985 = vmatprep.subr.mxu1 %v1193_v11 }
  0x54   :  { %959 = vmatpush3.msra.mxu0 %v1282_v53  ;;  %986 = vmatpush3.msra.mxu1 %v1193_v11 }
  0x55   :  { %960 = vmatprep.subr.mxu0 %v1294_v60  ;;  %987 = vmatprep.subr.mxu1 %v1202_v16 }
  0x56   :  { %961 = vmatpush3.msra.mxu0 %v1294_v60  ;;  %988 = vmatpush3.msra.mxu1 %v1202_v16 }
  0x57   :  { %962 = vmatprep.subr.mxu0 %v1308_v6  ;;  %989 = vmatprep.subr.mxu1 %v1224_v24 }
  0x58   :  { %963 = vmatpush3.msra.mxu0 %v1308_v6  ;;  %990 = vmatpush3.msra.mxu1 %v1224_v24 }
  0x59   :  { %964 = vmatprep.subr.mxu0 %v1323_v30  ;;  %991 = vmatprep.subr.mxu1 %v1230_v27 }
  0x5a   :  { %965 = vmatpush3.msra.mxu0 %v1323_v30  ;;  %992 = vmatpush3.msra.mxu1 %v1230_v27 }
  0x5b   :  { %966 = vmatprep.subr.mxu0 %v1341_v40  ;;  %993 = vmatprep.subr.mxu1 %v1249_v34 }
  0x5c   :  { %967 = vmatpush3.msra.mxu0 %v1341_v40  ;;  %994 = vmatpush3.msra.mxu1 %v1249_v34 }
  0x5d   :  { %968 = vmatprep.subr.mxu0 %v1353_v51  ;;  %995 = vmatprep.subr.mxu1 %v1267_v45 }
  0x5e   :  { %969 = vmatpush3.msra.mxu0 %v1353_v51  ;;  %996 = vmatpush3.msra.mxu1 %v1267_v45 }
  0x5f   :  { %970 = vmatprep.subr.mxu0 %v1363_v59  ;;  %997 = vmatprep.subr.mxu1 %v1273_v47 }
  0x60   :  { %971 = vmatpush3.msra.mxu0 %v1363_v59  ;;  %972 = vmatprep.mubr.f32.mxu0 %v1320_v25 }
  0x61   :  { %998 = vmatpush3.msra.mxu1 %v1273_v47  ;;  %973 = vmatmul.mubr.f32.vlgmr.msra.gmra.mxu0 %v1329_v32 }
  0x62   :  { %999 = vmatprep.subr.mxu1 %v1288_v57  ;;  %1010 = vmatprep.subr.mxu0 %v1216_v21 }
  0x63   :  { %1000 = vmatpush3.msra.mxu1 %v1288_v57  ;;  %1011 = vmatpush3.msra.mxu0 %v1216_v21 }
  0x64   :  { %1001 = vmatprep.subr.mxu1 %v1311_v8  ;;  %1012 = vmatprep.subr.mxu0 %v1219_v22 }
  0x65   :  { %1002 = vmatpush3.msra.mxu1 %v1311_v8  ;;  %1013 = vmatpush3.msra.mxu0 %v1219_v22 }
  0x66   :  { %1003 = vmatprep.subr.mxu1 %v1326_v31  ;;  %1014 = vmatprep.subr.mxu0 %v1222_v23 }
  0x67   :  { %1004 = vmatpush3.msra.mxu1 %v1326_v31  ;;  %1015 = vmatpush3.msra.mxu0 %v1222_v23 }
  0x68   :  { %1005 = vmatprep.subr.mxu1 %v1338_v38  ;;  %1016 = vmatprep.subr.mxu0 %v1228_v26 }
  0x69   :  { %1006 = vmatpush3.msra.mxu1 %v1338_v38  ;;  %1007 = vmatprep.mubr.f32.mxu1 %v1544_v14 }
  0x6a   :  { %1017 = vmatpush3.msra.mxu0 %v1228_v26  ;;  %1008 = vmatmul.mubr.f32.vlgmr.msra.gmra.mxu1 %v1545_v15 }
  0x6b   :  { %1018 = vmatprep.subr.mxu0 %v1233_v28  ;;  %1045 = vmatprep.subr.mxu1 %v1183_v3 }
  0x6c   :  { %1019 = vmatpush3.msra.mxu0 %v1233_v28  ;;  %1046 = vmatpush3.msra.mxu1 %v1183_v3 }
  0x6d   :  { %1020 = vmatprep.subr.mxu0 %v1255_v39  ;;  %1047 = vmatprep.subr.mxu1 %v1185_v4 }
  0x6e   :  { %1021 = vmatpush3.msra.mxu0 %v1255_v39  ;;  %1048 = vmatpush3.msra.mxu1 %v1185_v4 }
  0x6f   :  { %1022 = vmatprep.subr.mxu0 %v1261_v42  ;;  %1049 = vmatprep.subr.mxu1 %v1187_v5 }
  0x70   :  { %1023 = vmatpush3.msra.mxu0 %v1261_v42  ;;  %1050 = vmatpush3.msra.mxu1 %v1187_v5 }
  0x71   :  { %1024 = vmatprep.subr.mxu0 %v1279_v52  ;;  %1051 = vmatprep.subr.mxu1 %v1189_v9 }
  0x72   :  { %1025 = vmatpush3.msra.mxu0 %v1279_v52  ;;  %1052 = vmatpush3.msra.mxu1 %v1189_v9 }
  0x73   :  { %1026 = vmatprep.subr.mxu0 %v1291_v58  ;;  %1053 = vmatprep.subr.mxu1 %v1191_v10 }
  0x74   :  { %1027 = vmatpush3.msra.mxu0 %v1291_v58  ;;  %1054 = vmatpush3.msra.mxu1 %v1191_v10 }
  0x75   :  { %1028 = vmatprep.subr.mxu0 %v1305_v1  ;;  %1055 = vmatprep.subr.mxu1 %v1193_v11 }
  0x76   :  { %1029 = vmatpush3.msra.mxu0 %v1305_v1  ;;  %1056 = vmatpush3.msra.mxu1 %v1193_v11 }
  0x77   :  { %1030 = vmatprep.subr.mxu0 %v1317_v13  ;;  %1057 = vmatprep.subr.mxu1 %v1202_v16 }
  0x78   :  { %1031 = vmatpush3.msra.mxu0 %v1317_v13  ;;  %1058 = vmatpush3.msra.mxu1 %v1202_v16 }
  0x79   :  { %1032 = vmatprep.subr.mxu0 %v1335_v37  ;;  %1059 = vmatprep.subr.mxu1 %v1224_v24 }
  0x7a   :  { %1033 = vmatpush3.msra.mxu0 %v1335_v37  ;;  %1060 = vmatpush3.msra.mxu1 %v1224_v24 }
  0x7b   :  { %1034 = vmatprep.subr.mxu0 %v1348_v49  ;;  %1061 = vmatprep.subr.mxu1 %v1230_v27 }
  0x7c   :  { %1035 = vmatpush3.msra.mxu0 %v1348_v49  ;;  %1062 = vmatpush3.msra.mxu1 %v1230_v27 }
  0x7d   :  { %1036 = vmatprep.subr.mxu0 %v1360_v56  ;;  %1063 = vmatprep.subr.mxu1 %v1249_v34 }
  0x7e   :  { %1037 = vmatpush3.msra.mxu0 %v1360_v56  ;;  %1064 = vmatpush3.msra.mxu1 %v1249_v34 }
  0x7f   :  { %1038 = vmatprep.subr.mxu0 %v1376_v12  ;;  %1065 = vmatprep.subr.mxu1 %v1267_v45 }
  0x80   :  { %1039 = vmatpush3.msra.mxu0 %v1376_v12  ;;  %1066 = vmatpush3.msra.mxu1 %v1267_v45 }
  0x81   :  { %1040 = vmatprep.subr.mxu0 %v1383_v36  ;;  %1067 = vmatprep.subr.mxu1 %v1273_v47 }
  0x82   :  { %1041 = vmatpush3.msra.mxu0 %v1383_v36  ;;  %1042 = vmatprep.mubr.f32.mxu0 %v1296_v61 }
  0x83   :  { %1068 = vmatpush3.msra.mxu1 %v1273_v47  ;;  %1043 = vmatmul.mubr.f32.vlgmr.msra.gmra.mxu0 %v1299_v62 }
  0x84   :  { %1069 = vmatprep.subr.mxu1 %v1288_v57  ;;  %1077 = vmatprep.mubr.f32.mxu1 %v1296_v61 }
  0x85   :  { %1070 = vmatpush3.msra.mxu1 %v1288_v57 }
  0x86   :  { %1071 = vmatprep.subr.mxu1 %v1311_v8 }
  0x87   :  { %1072 = vmatpush3.msra.mxu1 %v1311_v8 }
  0x88   :  { %1073 = vmatprep.subr.mxu1 %v1326_v31 }
  0x89   :  { %1074 = vmatpush3.msra.mxu1 %v1326_v31 }
  0x8a   :  { %1075 = vmatprep.subr.mxu1 %v1338_v38 }
  0x8b   :  { %1076 = vmatpush3.msra.mxu1 %v1338_v38 }
  0x8c   :  { %1078 = vmatmul.mubr.f32.vlgmr.msra.gmra.mxu1 %v1299_v62 }
 0x100   :  { %v904_v3 = vpop.f32.mrf.mxu0 }
 0x102   :  { %v145_v4 = vpop.f32.mrf.mxu0 }
 0x108   :  { %v939_v5 = vpop.f32.mrf.mxu1 }
 0x109   :  { %v313_v17 = vadd.f32 %v939_v5, %v904_v3 }
 0x10a   :  { %v306_v10 = vpop.f32.mrf.mxu1 }
 0x10b   :  { %v307_v20 = vadd.f32 %v306_v10, %v145_v4 }
 0x121   :  { %v974_v9 = vpop.f32.mrf.mxu0 }
 0x122   :  { %v424_v21 = vadd.f32 %v974_v9, %v313_v17 }
 0x123   :  { %v416_v11 = vpop.f32.mrf.mxu0 }
 0x124   :  { %v417_v23 = vadd.f32 %v416_v11, %v307_v20 }
 0x12a   :  { %v1009_v16 = vpop.f32.mrf.mxu1 }
 0x12b   :  { %v521_v24 = vadd.f32 %v1009_v16, %v424_v21 }
 0x12c   :  { %v512_v22 = vpop.f32.mrf.mxu1 }
 0x12d   :  { %v513_v27 = vadd.f32 %v512_v22, %v417_v23 }
 0x143   :  { %v1044_v19 = vpop.f32.mrf.mxu0 }
 0x144   :  { %v646_v28 = vadd.f32 %v1044_v19, %v521_v24 }
 0x145   :  { %v639_v26 = vpop.f32.mrf.mxu0 }
 0x146   :  { %v640_v33 = vadd.f32 %v639_v26, %v513_v27 }
 0x14c   :  { %v1079_v29 = vpop.f32.mrf.mxu1 }
 0x14d   :  { %v739_v34 = vadd.f32 %v1079_v29, %v646_v28 }
 0x14e   :  { %v732_v39 = vpop.f32.mrf.mxu1 }
 0x14f   :  { %743 = vst [vmem:[#allocation7 + $0x8] sm:$0xff] %v739_v34  ;;  %v733_v42 = vadd.f32 %v732_v39, %v640_v33 }
 0x151   :  { %742 = vst [vmem:[#allocation7] sm:$0xff] %v733_v42 }
 0x152   :  { %1136 = shalt.err (!%p1133_p0)
}
 0x153   :  { %755 = dma.vmem_to_hbm [thread:$0]  %s750_s1, 256, %s1541_s2, [#allocation4], %s1152_s12, %s1152_s12, %s1153_s13  }
 0x154   :  { %1149 = dma.done.wait [#allocation4], 256  }
 0x155   :  { %1150 = vsyncadd [#allocation4], 4294967040 }
 0x156   :  { %759 = vsyncpa [#allocation3], 1 }
 0x157   :  { %760 = vsyncpa [#allocation6], 1 }
 0x158   :  { %761 = vsyncpa [#allocation4], 1 }

</bundles_post_ra>
